<compile_context>
chip_gen: v7x
topology: tpu7x:2x2x1
jax: 0.10.0
libtpu: 0.0.40
codegen_flags: <defaults>
</compile_context>

<pallas_src>
import functools

import jax
import jax.numpy as jnp
from jax.experimental import pallas as pl
from jax.experimental.pallas import tpu as pltpu

IN_FEATURES = 23
OUT_FEATURES = 1

# Rows per grid step.  VMEM per step (f32, double-buffered, lane-padded to 128):
#   x   : 2 * TB * 128 * 4 B = 8 MiB
#   out : 2 * TB * 128 * 4 B = 8 MiB   ((TB, 1) block is lane-padded in VMEM)
#   w_t : ~8 KiB (grid-resident)
# => ~16 MiB, covered by vmem_limit_bytes=32 MiB below (over v5e's 16 MiB default).
TILE_B = 8192

# Below this batch size, pallas_call dispatch + per-step overhead loses to XLA.
_SMALL_BATCH = 8192


def _round_up(n: int, m: int) -> int:
    return ((n + m - 1) // m) * m


def _svm_kernel(x_ref, wt_ref, b_ref, o_ref, *, apply_sign: bool):
    # x_ref : (TB, 23) VMEM batch tile (double-buffered by Pallas)
    # wt_ref: (23, 1)  VMEM, grid-resident (same block every step)
    # b_ref : (1,)     SMEM scalar
    # o_ref : (TB, 1)  VMEM output tile
    #
    # MXU matmul (K=23, N=1): even at <1% MXU occupancy this finishes well
    # under the HBM DMA time, instead of saturating the XLU with rotate+adds.
    y = jnp.dot(x_ref[...], wt_ref[...], preferred_element_type=jnp.float32)
    y = y + b_ref[0]
    if apply_sign:
        # Matches the module's custom sign(): x >= 0 -> 1, x < 0 -> -1.
        y = jnp.where(y >= 0.0, 1.0, -1.0)
    o_ref[...] = y.astype(o_ref.dtype)


def _svm_pallas(x, weight, bias, *, apply_sign: bool = False, tile_b: int = TILE_B):
    """Tiled, pipelined Pallas implementation of x @ weight.T + bias [+ sign]."""
    B = x.shape[0]
    # Clamp tile size for small batches; keep sublane (8) alignment.
    tb = min(tile_b, _round_up(max(B, 8), 8))
    n_tiles = pl.cdiv(B, tb)          # partial last block handled by Pallas
    w_t = weight.T                    # (23, 1): tiny wrapper-side transpose

    cost = pl.CostEstimate(
        flops=2 * B * IN_FEATURES,
        transcendentals=0,
        bytes_accessed=(B * IN_FEATURES * 4            # read x
                        + B * OUT_FEATURES * 4         # write y
                        + IN_FEATURES * OUT_FEATURES * 4
                        + OUT_FEATURES * 4),
    )

    return pl.pallas_call(
        functools.partial(_svm_kernel, apply_sign=apply_sign),
        out_shape=jax.ShapeDtypeStruct((B, OUT_FEATURES), jnp.float32),
        grid_spec=pltpu.PrefetchScalarGridSpec(
            num_scalar_prefetch=0,
            grid=(n_tiles,),
            in_specs=[
                # x: one batch tile per grid step (double-buffered by Pallas).
                pl.BlockSpec((tb, IN_FEATURES), lambda i: (i, 0)),
                # weight^T: same block every step -> stays resident in VMEM.
                pl.BlockSpec((IN_FEATURES, OUT_FEATURES), lambda i: (0, 0)),
                # bias: whole (1,) array in SMEM, read as a scalar.
                pl.BlockSpec(memory_space=pltpu.MemorySpace.SMEM),
            ],
            out_specs=pl.BlockSpec((tb, OUT_FEATURES), lambda i: (i, 0)),
        ),
        compiler_params=pltpu.CompilerParams(
            dimension_semantics=("parallel",),       # batch tiles independent
            vmem_limit_bytes=32 * 1024 * 1024,       # covers TB=8192 on v5e too
        ),
        cost_estimate=cost,
    )(x, w_t, bias)


def svm_forward(x, weight, bias):
    """Forward pass of SVM: x @ weight.T + bias.

    x: (B, 23) f32, weight: (1, 23) f32, bias: (1,) f32 -> (B, 1) f32
    """
    if x.shape[0] < _SMALL_BATCH:
        return x @ weight.T + bias
    return _svm_pallas(x, weight, bias, apply_sign=False)


def svm_pred(x, weight, bias):
    """Equivalent of SVM.pred: sign(forward(x)) with sign(0) == 1."""
    if x.shape[0] < _SMALL_BATCH:
        y = x @ weight.T + bias
        return jnp.where(y >= 0.0, 1.0, -1.0)
    return _svm_pallas(x, weight, bias, apply_sign=True)


if __name__ == "__main__":
    key = jax.random.PRNGKey(0)
    k_x, k_x2, k_w, k_b = jax.random.split(key, 4)

    # Deterministic params mimicking nn.Linear init: U(-1/sqrt(fan_in), 1/sqrt(fan_in)).
    bound = 1.0 / (IN_FEATURES ** 0.5)
    weight = jax.random.uniform(
        k_w, (OUT_FEATURES, IN_FEATURES), minval=-bound, maxval=bound, dtype=jnp.float32
    )
    bias = jax.random.uniform(
        k_b, (OUT_FEATURES,), minval=-bound, maxval=bound, dtype=jnp.float32
    )

    # --- Small batch: force the Pallas kernel (single sublane-aligned tile) ---
    B_small = 8
    x_small = jax.random.normal(k_x, (B_small, IN_FEATURES), dtype=jnp.float32)
    ref_small = x_small @ weight.T + bias
    y_small = jax.block_until_ready(_svm_pallas(x_small, weight, bias))
    assert y_small.shape == (B_small, OUT_FEATURES)
    assert jnp.allclose(y_small, ref_small, atol=1e-5, rtol=1e-5)

    # Small-batch wrapper fast path still matches.
    y_fast = jax.block_until_ready(svm_forward(x_small, weight, bias))
    assert jnp.allclose(y_fast, ref_small, atol=1e-5, rtol=1e-5)

    # --- Non-aligned batch, multi-tile + partial last block (no wrapper pad/slice) ---
    B_med = 777
    x_med = jax.random.normal(k_x2, (B_med, IN_FEATURES), dtype=jnp.float32)
    ref_med = x_med @ weight.T + bias
    y_med = jax.block_until_ready(_svm_pallas(x_med, weight, bias, tile_b=256))
    assert y_med.shape == (B_med, OUT_FEATURES)
    assert jnp.allclose(y_med, ref_med, atol=1e-5, rtol=1e-5)

    # Single-tile (default tile size) path on the same data.
    y_med1 = jax.block_until_ready(_svm_pallas(x_med, weight, bias))
    assert jnp.allclose(y_med1, ref_med, atol=1e-5, rtol=1e-5)

    # --- pred path with fused sign epilogue ---
    p = jax.block_until_ready(_svm_pallas(x_med, weight, bias, apply_sign=True))
    p_ref = jnp.where(ref_med >= 0.0, 1.0, -1.0)
    assert jnp.all(jnp.abs(p) == 1.0)
    assert jnp.array_equal(p, p_ref)

    print("KERNEL_OK")
</pallas_src>

<mosaic_0001>
module attributes {stable_mosaic.version = 11 : i64} {
  func.func @_svm_kernel(%arg0: i32, %arg1: memref<8x23xf32, #tpu.memory_space<vmem>>, %arg2: memref<23x1xf32, #tpu.memory_space<vmem>>, %arg3: memref<1xf32, #tpu.memory_space<smem>>, %arg4: memref<8x1xf32, #tpu.memory_space<vmem>>) attributes {dimension_semantics = [#tpu.dimension_semantics<parallel>], iteration_bounds = array<i64: 1>, scalar_prefetch = 0 : i64, scratch_operands = 0 : i64, tpu.core_type = #tpu.core_type<tc>, window_params = [{transform_indices = @transform_0, window_bounds = array<i64: 8, 23>}, {pipeline_mode = #tpu.pipeline_mode<synchronous>, transform_indices = @transform_1, window_bounds = array<i64: 23, 1>}, {transform_indices = @transform_2, window_bounds = array<i64: 1>}, {transform_indices = @transform_3, window_bounds = array<i64: 8, 1>}]} {
    %c0 = arith.constant 0 : index
    %c0_0 = arith.constant 0 : index
    %0 = vector.load %arg1[%c0, %c0_0] : memref<8x23xf32, #tpu.memory_space<vmem>>, vector<8x23xf32>
    %c0_1 = arith.constant 0 : index
    %c0_2 = arith.constant 0 : index
    %1 = vector.load %arg2[%c0_1, %c0_2] : memref<23x1xf32, #tpu.memory_space<vmem>>, vector<23x1xf32>
    %cst = arith.constant dense<0.000000e+00> : vector<8x1xf32>
    %2 = tpu.matmul %0, %1, %cst {dimension_numbers = #tpu.dot_dimension_numbers<[1], [0], [0], [1], [0, 0, 1, 1], [], []>} : vector<8x23xf32>, vector<23x1xf32>, vector<8x1xf32> -> vector<8x1xf32>
    %c0_3 = arith.constant 0 : index
    %3 = memref.load %arg3[%c0_3] : memref<1xf32, #tpu.memory_space<smem>>
    %4 = vector.broadcast %3 : f32 to vector<8x1xf32>
    %5 = arith.addf %2, %4 : vector<8x1xf32>
    %c0_4 = arith.constant 0 : index
    %c0_5 = arith.constant 0 : index
    %6 = vector.load %arg4[%c0_4, %c0_5] : memref<8x1xf32, #tpu.memory_space<vmem>>, vector<8x1xf32>
    tpu.vector_store %arg4[%c0_4, %c0_5], %5 {strides = array<i32>} : memref<8x1xf32, #tpu.memory_space<vmem>>, vector<8x1xf32>,
    return
  }
  func.func @transform_0(%arg0: i32) -> (i32, i32) {
    %c0_i32 = arith.constant 0 : i32
    %c0_i32_0 = arith.constant 0 : i32
    return %arg0, %c0_i32 : i32, i32
  }
  func.func @transform_1(%arg0: i32) -> (i32, i32) {
    %c0_i32 = arith.constant 0 : i32
    %c0_i32_0 = arith.constant 0 : i32
    %c0_i32_1 = arith.constant 0 : i32
    return %c0_i32, %c0_i32_0 : i32, i32
  }
  func.func @transform_2(%arg0: i32) -> i32 {
    %c0_i32 = arith.constant 0 : i32
    %c0_i32_0 = arith.constant 0 : i32
    return %c0_i32 : i32
  }
  func.func @transform_3(%arg0: i32) -> (i32, i32) {
    %c0_i32 = arith.constant 0 : i32
    %c0_i32_0 = arith.constant 0 : i32
    return %arg0, %c0_i32 : i32, i32
  }
}

</mosaic_0001>

<bundles_post_ra>
// kernel: tpu_custom_call.1
= control target key start
LH: loop header
LB: loop body
LE: loop exit
PB: predicated region body
PF: predicated region fallthrough
CT: control target
= control target key end

     0   :  { %v126_v0 = vmov 0.0|0.0   ;;  %vm127_vm0 = vmmov 0   ;;  %v128_v3 = vmov 0.0   ;;  %vm25_vm1 = vcmask 1046528   ;;  %s167_s1 = inlined_call_operand.vmem [shape: f32[23,1], index: 1, kind: input, shape index: {}]   ;;  %s168_s0 = inlined_call_operand.vmem [shape: f32[8,23], index: 0, kind: input, shape index: {}]   ;;  %s169_s2 = inlined_call_operand.<no memory space> [shape: f32[1], index: 2, kind: input, shape index: {}]   ;;  %s170_s3 = inlined_call_operand.vmem [shape: f32[8,1], index: 3, kind: output, shape index: {}]  }
   0x1   :  { %120 = vmatprep.subr.bf16.mxu0 %v126_v0  ;;  %v16_v1 = vld [vmem:[%s167_s1] sm:$0xff]  ;;  %v17_v2 = vld [vmem:[%s167_s1 + $0x8] sm:$0xff]  ;;  %117 = vmatprep.mubr.msk.f32.mxu0 %vm127_vm0, %v128_v3  ;;  %v18_v5 = vld [vmem:[%s167_s1 + $0x10] sm:$0x7f]  ;;  %vm21_vm2 = vcmask 187392   ;;  %v20_v7 = vstv %s169_s2  ;;  %vm99_vm3 = vcmask 7168  }
   0x2   :  { %v121_v4 = vpack.c.bf16 %v17_v2, %v16_v1  ;;  %v15_v6 = vld [vmem:[%s168_s0] sm:$0xff] }
   0x4   :  { %122 = vmatpush3.bf16.msra.mxu0 %v121_v4 }
   0x5   :  { %115 = vmatprep.subr.mxu0 %v128_v3 }
   0x8   :  { %116 = vmatpush3.msk.msra.mxu0 %vm25_vm1, %v18_v5 }
   0x9   :  { %118 = vmatmul.mubr.msk.f32.vlgmr.msra.gmra.mrb[0].mxu0 %vm21_vm2, %v15_v6 }
  0xdc   :  { %v95_v8 = vpop.f32.mrb[0].mxu0 }
  0xdd   :  { %v96_v9 = vadd.f32 %v95_v8, %v20_v7  ;;  %v119_v10 = vpop.f32.mrb[1].mxu0 }
  0xdf   :  { %100 = vst.msk [vmem:[%s170_s3] sm:$0xff] %vm99_vm3, %v96_v9 }

</bundles_post_ra>
